<compile_context>
chip_gen: v7x
topology: tpu7x:2x2x1
jax: 0.10.0
libtpu: 0.0.40
codegen_flags: <defaults>
</compile_context>

<pallas_src>
import functools

import jax
import jax.numpy as jnp
from jax.experimental import pallas as pl
from jax.experimental.pallas import tpu as pltpu

_LANE = 128
_ACC_ROWS = 64                         # (64,128) f32 accumulator -> 8 independent vreg chains
_TARGET_BLOCK_BYTES = 4 * 1024 * 1024  # ~4 MiB per streaming block (8 MiB double-buffered)


def _round_up(v: int, m: int) -> int:
    return -(-v // m) * m


def _tensorcores_per_chip() -> int:
    """Best-effort TensorCore count (v7x: 2). Conservative fallback: 1."""
    try:
        info = pltpu.get_tpu_info()
        for name in ("num_cores", "num_tensorcores", "tensorcores_per_chip",
                     "cores_per_chip", "num_cores_per_chip", "core_count"):
            v = getattr(info, name, None)
            if isinstance(v, int) and v >= 1:
                return v
    except Exception:
        pass
    return 1


def _gen_adv_loss_kernel(x_ref, o_ref, *, total_rows: int, block_rows: int,
                         blocks_per_split: int):
    """Accumulate sum((x - 1)^2) into the resident (64, 128) f32 output block."""
    j = pl.program_id(0)   # split axis (CORE_PARALLEL on multi-TC chips)
    i = pl.program_id(1)   # streaming reduction axis ("arbitrary")

    @pl.when(i == 0)
    def _():
        o_ref[...] = jnp.zeros_like(o_ref)

    # Steady-state VPU work: cast (free for f32), subtract, square.
    d = x_ref[...].astype(jnp.float32) - 1.0
    sq = d * d

    folded = (block_rows // _ACC_ROWS, _ACC_ROWS, _LANE)
    block_idx = j * blocks_per_split + i
    is_full = (block_idx + 1) * block_rows <= total_rows

    # Hot path: full block, unmasked fold.  Summing over the leading axis is
    # pure element-wise vreg adds with 8 independent accumulation chains.
    @pl.when(is_full)
    def _():
        o_ref[...] += jnp.sum(sq.reshape(folded), axis=0)

    # Cold path (at most one block per split): ragged last block or the
    # clamped phantom block.  Mask AFTER squaring (garbage may be Inf/NaN;
    # select does not propagate it).
    @pl.when(jnp.logical_not(is_full))
    def _():
        row_ids = block_idx * block_rows + jax.lax.broadcasted_iota(
            jnp.int32, (block_rows, 1), 0)
        masked = jnp.where(row_ids < total_rows, sq, 0.0)
        o_ref[...] += jnp.sum(masked.reshape(folded), axis=0)


def generator_adversarial_loss(fake: jax.Array) -> jax.Array:
    """JAX/Pallas equivalent of GeneratorAdversarialLoss.forward(fake)."""
    n = fake.size
    if n == 0:
        return jnp.array(jnp.nan, dtype=fake.dtype)   # torch.mean of empty -> nan

    x = fake.reshape(-1)   # metadata-only reshape, keeps the original dtype

    if n % _LANE:
        # TODO(synk): rare ragged-lane path; pads with 1.0 ((1-1)^2 == 0) at
        # the cost of one extra HBM copy.  Not hit for typical feature maps.
        pad = _LANE - n % _LANE
        x = jnp.concatenate([x, jnp.ones((pad,), x.dtype)])

    x2 = x.reshape(-1, _LANE)
    rows = x2.shape[0]

    # Block size targeted by bytes (~4 MiB), rounded to the accumulator height
    # (a multiple of every dtype's minimum sublane tile).
    itemsize = jnp.dtype(x2.dtype).itemsize
    target_rows = _TARGET_BLOCK_BYTES // (_LANE * itemsize)
    block_rows = min(_round_up(target_rows, _ACC_ROWS),
                     _round_up(rows, _ACC_ROWS))
    num_blocks = -(-rows // block_rows)

    # One split per TensorCore on multi-TC chips (v7x); otherwise a single
    # split (no phantom block, no mid-stream re-init on v5e/v6e).
    cores = _tensorcores_per_chip()
    num_splits = 2 if (cores >= 2 and num_blocks >= 2) else 1
    blocks_per_split = -(-num_blocks // num_splits)

    def x_index_map(j, i):
        # Clamp so a phantom block (odd num_blocks, 2-way split) re-reads
        # valid data; the kernel masks it to zero.
        return (jnp.minimum(j * blocks_per_split + i, num_blocks - 1), 0)

    sem0 = pltpu.CORE_PARALLEL if num_splits > 1 else pltpu.ARBITRARY

    partials = pl.pallas_call(
        functools.partial(
            _gen_adv_loss_kernel,
            total_rows=rows,
            block_rows=block_rows,
            blocks_per_split=blocks_per_split,
        ),
        out_shape=jax.ShapeDtypeStruct((num_splits, _ACC_ROWS, _LANE),
                                       jnp.float32),
        grid_spec=pltpu.PrefetchScalarGridSpec(
            num_scalar_prefetch=0,
            grid=(num_splits, blocks_per_split),
            in_specs=[pl.BlockSpec((block_rows, _LANE), x_index_map)],
            # Squeezed leading dim: the kernel accumulates directly into the
            # resident (64, 128) output block (no scratch, no final copy).
            out_specs=pl.BlockSpec((None, _ACC_ROWS, _LANE),
                                   lambda j, i: (j, 0, 0)),
        ),
        compiler_params=pltpu.CompilerParams(
            dimension_semantics=(sem0, pltpu.ARBITRARY),
            vmem_limit_bytes=32 * 1024 * 1024),
    )(x2)

    # Single cheap cross-lane reduce; fold the 0.5 and 1/N into one scale.
    loss = jnp.sum(partials) * (0.5 / n)
    return loss.astype(fake.dtype)


if __name__ == "__main__":
    key = jax.random.PRNGKey(0)
    # Discriminator-style "fake" scores, NCHW-shaped like a patch-GAN output.
    fake = jax.random.normal(key, (2, 4, 16, 16), dtype=jnp.float32)

    loss = jax.jit(generator_adversarial_loss)(fake)
    jax.block_until_ready(loss)

    # Reference check against plain JAX (same math as the PyTorch module).
    ref = jnp.mean((fake.astype(jnp.float32) - 1.0) ** 2 / 2.0)
    assert jnp.allclose(loss, ref, rtol=1e-5, atol=1e-6), (loss, ref)

    print("KERNEL_OK")
</pallas_src>

<mosaic_0001>
module attributes {stable_mosaic.version = 11 : i64} {
  func.func @_gen_adv_loss_kernel(%arg0: i32, %arg1: i32, %arg2: memref<64x128xf32, #tpu.memory_space<vmem>>, %arg3: memref<1x64x128xf32, #tpu.memory_space<vmem>>) attributes {dimension_semantics = [#tpu.dimension_semantics<arbitrary>, #tpu.dimension_semantics<arbitrary>], iteration_bounds = array<i64: 1, 1>, scalar_prefetch = 0 : i64, scratch_operands = 0 : i64, tpu.core_type = #tpu.core_type<tc>, window_params = [{transform_indices = @transform_0, window_bounds = array<i64: 64, 128>}, {transform_indices = @transform_1, window_bounds = array<i64: 1, 64, 128>}]} {
    %c0_i32 = arith.constant 0 : i32
    %0 = arith.cmpi eq, %arg1, %c0_i32 : i32
    %1 = arith.extui %0 : i1 to i32
    %c0_i32_0 = arith.constant 0 : i32
    %2 = arith.cmpi ne, %1, %c0_i32_0 : i32
    scf.if %2 {
      %cst_5 = arith.constant 0.000000e+00 : f32
      %17 = vector.broadcast %cst_5 : f32 to vector<64x128xf32>
      %c0_6 = arith.constant 0 : index
      %c0_7 = arith.constant 0 : index
      %c0_8 = arith.constant 0 : index
      %18 = vector.load %arg3[%c0_6, %c0_7, %c0_8] : memref<1x64x128xf32, #tpu.memory_space<vmem>>, vector<1x64x128xf32>
      %19 = vector.shape_cast %18 : vector<1x64x128xf32> to vector<64x128xf32>
      %20 = vector.shape_cast %17 : vector<64x128xf32> to vector<1x64x128xf32>
      tpu.vector_store %arg3[%c0_6, %c0_7, %c0_8], %20 {strides = array<i32>} : memref<1x64x128xf32, #tpu.memory_space<vmem>>, vector<1x64x128xf32>,
    } else {
    }
    %c0 = arith.constant 0 : index
    %c0_1 = arith.constant 0 : index
    %3 = vector.load %arg2[%c0, %c0_1] : memref<64x128xf32, #tpu.memory_space<vmem>>, vector<64x128xf32>
    %cst = arith.constant 1.000000e+00 : f32
    %4 = vector.broadcast %cst : f32 to vector<64x128xf32>
    %5 = arith.subf %3, %4 : vector<64x128xf32>
    %6 = arith.mulf %5, %5 : vector<64x128xf32>
    %c1_i32 = arith.constant 1 : i32
    %7 = arith.muli %arg0, %c1_i32 : i32
    %8 = arith.addi %7, %arg1 : i32
    %c1_i32_2 = arith.constant 1 : i32
    %9 = arith.addi %8, %c1_i32_2 : i32
    %c64_i32 = arith.constant 64 : i32
    %10 = arith.muli %9, %c64_i32 : i32
    %c16_i32 = arith.constant 16 : i32
    %11 = arith.cmpi sle, %10, %c16_i32 : i32
    %12 = arith.extui %11 : i1 to i32
    %c0_i32_3 = arith.constant 0 : i32
    %13 = arith.cmpi ne, %12, %c0_i32_3 : i32
    scf.if %13 {
      %c0_5 = arith.constant 0 : index
      %c0_6 = arith.constant 0 : index
      %c0_7 = arith.constant 0 : index
      %17 = vector.load %arg3[%c0_5, %c0_6, %c0_7] : memref<1x64x128xf32, #tpu.memory_space<vmem>>, vector<1x64x128xf32>
      %18 = vector.shape_cast %17 : vector<1x64x128xf32> to vector<64x128xf32>
      %19 = vector.shape_cast %6 : vector<64x128xf32> to vector<1x64x128xf32>
      %cst_8 = arith.constant dense<0.000000e+00> : vector<64x128xf32>
      %20 = vector.multi_reduction <add>, %19, %cst_8 [0] : vector<1x64x128xf32> to vector<64x128xf32>
      %21 = arith.addf %18, %20 : vector<64x128xf32>
      %c0_9 = arith.constant 0 : index
      %c0_10 = arith.constant 0 : index
      %c0_11 = arith.constant 0 : index
      %22 = vector.load %arg3[%c0_9, %c0_10, %c0_11] : memref<1x64x128xf32, #tpu.memory_space<vmem>>, vector<1x64x128xf32>
      %23 = vector.shape_cast %22 : vector<1x64x128xf32> to vector<64x128xf32>
      %24 = vector.shape_cast %21 : vector<64x128xf32> to vector<1x64x128xf32>
      tpu.vector_store %arg3[%c0_9, %c0_10, %c0_11], %24 {strides = array<i32>} : memref<1x64x128xf32, #tpu.memory_space<vmem>>, vector<1x64x128xf32>,
    } else {
    }
    %true = arith.constant true
    %14 = arith.xori %11, %true : i1
    %15 = arith.extui %14 : i1 to i32
    %c0_i32_4 = arith.constant 0 : i32
    %16 = arith.cmpi ne, %15, %c0_i32_4 : i32
    scf.if %16 {
      %c64_i32_5 = arith.constant 64 : i32
      %17 = arith.muli %8, %c64_i32_5 : i32
      %18 = tpu.iota {dimensions = array<i32: 0>} : vector<64x1xi32>
      %19 = vector.broadcast %17 : i32 to vector<64x1xi32>
      %20 = arith.addi %19, %18 : vector<64x1xi32>
      %c16_i32_6 = arith.constant 16 : i32
      %21 = vector.broadcast %c16_i32_6 : i32 to vector<64x1xi32>
      %22 = arith.cmpi slt, %20, %21 : vector<64x1xi32>
      %cst_7 = arith.constant 0.000000e+00 : f32
      %23 = vector.shape_cast %22 : vector<64x1xi1> to vector<64x1xi1>
      %24 = vector.broadcast %23 : vector<64x1xi1> to vector<64x128xi1>
      %25 = vector.broadcast %cst_7 : f32 to vector<64x128xf32>
      %26 = arith.select %24, %6, %25 : vector<64x128xi1>, vector<64x128xf32>
      %c0_8 = arith.constant 0 : index
      %c0_9 = arith.constant 0 : index
      %c0_10 = arith.constant 0 : index
      %27 = vector.load %arg3[%c0_8, %c0_9, %c0_10] : memref<1x64x128xf32, #tpu.memory_space<vmem>>, vector<1x64x128xf32>
      %28 = vector.shape_cast %27 : vector<1x64x128xf32> to vector<64x128xf32>
      %29 = vector.shape_cast %26 : vector<64x128xf32> to vector<1x64x128xf32>
      %cst_11 = arith.constant dense<0.000000e+00> : vector<64x128xf32>
      %30 = vector.multi_reduction <add>, %29, %cst_11 [0] : vector<1x64x128xf32> to vector<64x128xf32>
      %31 = arith.addf %28, %30 : vector<64x128xf32>
      %c0_12 = arith.constant 0 : index
      %c0_13 = arith.constant 0 : index
      %c0_14 = arith.constant 0 : index
      %32 = vector.load %arg3[%c0_12, %c0_13, %c0_14] : memref<1x64x128xf32, #tpu.memory_space<vmem>>, vector<1x64x128xf32>
      %33 = vector.shape_cast %32 : vector<1x64x128xf32> to vector<64x128xf32>
      %34 = vector.shape_cast %31 : vector<64x128xf32> to vector<1x64x128xf32>
      tpu.vector_store %arg3[%c0_12, %c0_13, %c0_14], %34 {strides = array<i32>} : memref<1x64x128xf32, #tpu.memory_space<vmem>>, vector<1x64x128xf32>,
    } else {
    }
    return
  }
  func.func @transform_0(%arg0: i32, %arg1: i32) -> (i32, i32) {
    %c1_i32 = arith.constant 1 : i32
    %0 = arith.muli %arg0, %c1_i32 : i32
    %1 = arith.addi %0, %arg1 : i32
    %c0_i32 = arith.constant 0 : i32
    %2 = arith.minsi %1, %c0_i32 : i32
    %c0_i32_0 = arith.constant 0 : i32
    %c0_i32_1 = arith.constant 0 : i32
    return %2, %c0_i32_0 : i32, i32
  }
  func.func @transform_1(%arg0: i32, %arg1: i32) -> (i32, i32, i32) {
    %c0_i32 = arith.constant 0 : i32
    %c0_i32_0 = arith.constant 0 : i32
    %c0_i32_1 = arith.constant 0 : i32
    return %arg0, %c0_i32, %c0_i32_0 : i32, i32, i32
  }
}

</mosaic_0001>

<bundles_post_ra>
// kernel: generator_adversarial_loss.1
= control target key start
LH: loop header
LB: loop body
LE: loop exit
PB: predicated region body
PF: predicated region fallthrough
CT: control target
= control target key end

     0   :  { %v231_v2 = vmov 0.0   ;;  %s272_s1 = inlined_call_operand.vmem [shape: f32[1,64,128], index: 1, kind: output, shape index: {}]   ;;  %s273_s0 = inlined_call_operand.vmem [shape: f32[16,128], index: 0, kind: input, shape index: {}]  }
   0x1   :  { %v62_v0 = vld [vmem:[%s273_s0] sm:$0xff]  ;;  %v63_v1 = vld [vmem:[%s273_s0 + $0x8] sm:$0xff]  ;;  %206 = vst [vmem:[%s272_s1 + $0x10] sm:$0xff] %v231_v2  ;;  %207 = vst [vmem:[%s272_s1 + $0x18] sm:$0xff] %v231_v2 }
   0x2   :  { %208 = vst [vmem:[%s272_s1 + $0x20] sm:$0xff] %v231_v2  ;;  %209 = vst [vmem:[%s272_s1 + $0x28] sm:$0xff] %v231_v2  ;;  %v222_v3 = vadd.f32 -1.0, %v62_v0  ;;  %v223_v4 = vadd.f32 -1.0, %v63_v1 }
   0x3   :  { %210 = vst [vmem:[%s272_s1 + $0x30] sm:$0xff] %v231_v2  ;;  %211 = vst [vmem:[%s272_s1 + $0x38] sm:$0xff] %v231_v2 }
   0x4   :  { %v78_v5 = vmul.f32 %v222_v3, %v222_v3  ;;  %v79_v6 = vmul.f32 %v223_v4, %v223_v4 }
   0x6   :  { %204 = vst [vmem:[%s272_s1] sm:$0xff] %v78_v5  ;;  %205 = vst [vmem:[%s272_s1 + $0x8] sm:$0xff] %v79_v6 }

</bundles_post_ra>
